<compile_context>
chip_gen: v6e
topology: v6e:2x2x1
jax: 0.10.0
libtpu: 0.0.40
codegen_flags: <defaults>
</compile_context>

<pallas_src>
import functools

import jax
import jax.numpy as jnp
from jax.experimental import pallas as pl
from jax.experimental.pallas import tpu as pltpu

_LANE = 128           # lane-axis width
_MAX_BLOCK_ROWS = 2048  # 2048 x 128 f32 = 1 MiB per input block


def _round_up(x, m):
    return (x + m - 1) // m * m


def _bce_elementwise(x, t, logits):
    """PyTorch-equivalent elementwise binary cross entropy (reduction='none')."""
    if logits:
        # binary_cross_entropy_with_logits (numerically stable form)
        return jnp.maximum(x, 0.0) - x * t + jnp.log1p(jnp.exp(-jnp.abs(x)))
    # binary_cross_entropy on probabilities; PyTorch clamps the logs at -100
    log_p = jnp.maximum(jnp.log(x), -100.0)
    log_1mp = jnp.maximum(jnp.log1p(-x), -100.0)
    return -(t * log_p + (1.0 - t) * log_1mp)


def _focal_from_bce(bce, alpha, gamma):
    pt = jnp.exp(-bce)
    one_minus_pt = 1.0 - pt
    gf = float(gamma)
    if gf == int(gf) and int(gf) >= 0:
        # integer_pow -> plain multiplies on the VPU (no EUP pow = exp+log)
        w = one_minus_pt ** int(gf)
    else:
        w = one_minus_pt ** jnp.float32(gf)
    return jnp.float32(alpha) * w * bce


def _focal_partial_sum_kernel(x_ref, t_ref, psum_ref, *, alpha, gamma, logits,
                              block_rows, total_rows, mask_tail):
    """Each grid step writes one independent (8,128) partial-sum block."""
    x = x_ref[...].astype(jnp.float32)
    t = t_ref[...].astype(jnp.float32)
    fl = _focal_from_bce(_bce_elementwise(x, t, logits), alpha, gamma)

    if mask_tail:
        # Last block may extend past the array; zero out out-of-range rows.
        row_ids = (pl.program_id(0) * block_rows
                   + jax.lax.broadcasted_iota(jnp.int32, fl.shape, 0))
        fl = jnp.where(row_ids < total_rows, fl, 0.0)

    # (block_rows, 128) -> (block_rows//8, 8, 128); summing over the leading
    # axis is just vreg-wise VPU adds (no cross-lane traffic).
    psum = jnp.sum(fl.reshape(block_rows // 8, 8, _LANE), axis=0)
    psum_ref[0] = psum


def _focal_map_kernel(x_ref, t_ref, o_ref, *, alpha, gamma, logits):
    """Elementwise focal loss (reduce=False path)."""
    x = x_ref[...].astype(jnp.float32)
    t = t_ref[...].astype(jnp.float32)
    fl = _focal_from_bce(_bce_elementwise(x, t, logits), alpha, gamma)
    o_ref[...] = fl.astype(o_ref.dtype)


def focal_loss(inputs, targets, alpha=1.0, gamma=2, logits=False, reduce=True):
    """JAX/Pallas equivalent of FocalLoss.forward(inputs, targets)."""
    assert inputs.shape == targets.shape
    orig_shape = inputs.shape
    orig_dtype = inputs.dtype
    n = inputs.size

    # Flatten (free for contiguous arrays); keep the original dtypes — the
    # kernel casts to f32 in-VMEM.
    x = inputs.reshape(-1)
    t = targets.reshape(-1)

    # Only pad the (<128-element) lane tail, with values whose loss is exactly
    # zero:  probabilities: (p=0, t=0) -> BCE=0 (with the -100 clamp);
    #        logits:        (x=-1e4, t=0) -> BCE=0 in f32.
    lane_pad = (-n) % _LANE
    if lane_pad:
        pad_val = -1e4 if logits else 0.0
        x = jnp.concatenate([x, jnp.full((lane_pad,), pad_val, dtype=x.dtype)])
        t = jnp.concatenate([t, jnp.zeros((lane_pad,), dtype=t.dtype)])

    rows = (n + lane_pad) // _LANE
    block_rows = max(8, min(_MAX_BLOCK_ROWS, _round_up(rows, 8)))
    num_blocks = pl.cdiv(rows, block_rows)

    x2 = x.reshape(rows, _LANE)
    t2 = t.reshape(rows, _LANE)

    in_specs = [
        pl.BlockSpec((block_rows, _LANE), lambda i: (i, 0)),
        pl.BlockSpec((block_rows, _LANE), lambda i: (i, 0)),
    ]
    bytes_in = (x2.size * x2.dtype.itemsize) + (t2.size * t2.dtype.itemsize)

    if reduce:
        mask_tail = (rows % block_rows) != 0
        kernel = functools.partial(
            _focal_partial_sum_kernel, alpha=float(alpha), gamma=gamma,
            logits=bool(logits), block_rows=block_rows, total_rows=rows,
            mask_tail=mask_tail)
        partials = pl.pallas_call(
            kernel,
            out_shape=jax.ShapeDtypeStruct((num_blocks, 8, _LANE), jnp.float32),
            grid_spec=pltpu.PrefetchScalarGridSpec(
                num_scalar_prefetch=0,
                grid=(num_blocks,),
                in_specs=in_specs,
                out_specs=pl.BlockSpec((1, 8, _LANE), lambda i: (i, 0, 0)),
            ),
            compiler_params=pltpu.CompilerParams(
                dimension_semantics=("parallel",)),
            cost_estimate=pl.CostEstimate(
                flops=12 * n,
                transcendentals=3 * n,
                bytes_accessed=bytes_in + num_blocks * 8 * _LANE * 4),
        )(x2, t2)
        # Tiny cross-block / cross-lane reduction + mean in the wrapper.
        return (jnp.sum(partials) / jnp.float32(n)).astype(orig_dtype)

    kernel = functools.partial(
        _focal_map_kernel, alpha=float(alpha), gamma=gamma, logits=bool(logits))
    out = pl.pallas_call(
        kernel,
        out_shape=jax.ShapeDtypeStruct((rows, _LANE), orig_dtype),
        grid_spec=pltpu.PrefetchScalarGridSpec(
            num_scalar_prefetch=0,
            grid=(num_blocks,),
            in_specs=in_specs,
            out_specs=pl.BlockSpec((block_rows, _LANE), lambda i: (i, 0)),
        ),
        compiler_params=pltpu.CompilerParams(
            dimension_semantics=("parallel",)),
        cost_estimate=pl.CostEstimate(
            flops=12 * n,
            transcendentals=3 * n,
            bytes_accessed=bytes_in + rows * _LANE * jnp.dtype(orig_dtype).itemsize),
    )(x2, t2)

    out_flat = out.reshape(-1)
    if lane_pad:
        out_flat = out_flat[:n]
    return out_flat.reshape(orig_shape)


if __name__ == "__main__":
    key = jax.random.PRNGKey(0)
    k1, k2 = jax.random.split(key)

    # FocalLoss has no learnable parameters; inputs are probabilities
    # (default logits=False) of shape [N, C, H, W] = [2, 4, 16, 16].
    x_shape = (2, 4, 16, 16)
    probs = jax.nn.sigmoid(jax.random.normal(k1, x_shape, dtype=jnp.float32))
    targets = (jax.random.uniform(k2, x_shape) < 0.5).astype(jnp.float32)

    # Default module config: alpha=1, gamma=2, logits=False, reduce=True
    loss = focal_loss(probs, targets)
    loss = jax.block_until_ready(loss)

    # Pure-JAX reference (same math as the torch forward) for a sanity check.
    bce_ref = -(targets * jnp.maximum(jnp.log(probs), -100.0)
                + (1.0 - targets) * jnp.maximum(jnp.log1p(-probs), -100.0))
    fl_ref = (1.0 - jnp.exp(-bce_ref)) ** 2 * bce_ref
    ref = jnp.mean(fl_ref)
    assert jnp.allclose(loss, ref, rtol=1e-5, atol=1e-6), (loss, ref)

    # Also exercise the reduce=False path once.
    elem = jax.block_until_ready(focal_loss(probs, targets, reduce=False))
    assert elem.shape == x_shape
    assert jnp.allclose(elem, fl_ref, rtol=1e-5, atol=1e-6)

    print("KERNEL_OK")
</pallas_src>

<mosaic_0001>
module attributes {stable_mosaic.version = 11 : i64} {
  func.func @_focal_partial_sum_kernel(%arg0: i32, %arg1: memref<16x128xf32, #tpu.memory_space<vmem>>, %arg2: memref<16x128xf32, #tpu.memory_space<vmem>>, %arg3: memref<1x8x128xf32, #tpu.memory_space<vmem>>) attributes {dimension_semantics = [#tpu.dimension_semantics<parallel>], iteration_bounds = array<i64: 1>, scalar_prefetch = 0 : i64, scratch_operands = 0 : i64, tpu.core_type = #tpu.core_type<tc>, window_params = [{transform_indices = @transform_0, window_bounds = array<i64: 16, 128>}, {transform_indices = @transform_1, window_bounds = array<i64: 16, 128>}, {transform_indices = @transform_2, window_bounds = array<i64: 1, 8, 128>}]} {
    %c0 = arith.constant 0 : index
    %c0_0 = arith.constant 0 : index
    %0 = vector.load %arg1[%c0, %c0_0] : memref<16x128xf32, #tpu.memory_space<vmem>>, vector<16x128xf32>
    %c0_1 = arith.constant 0 : index
    %c0_2 = arith.constant 0 : index
    %1 = vector.load %arg2[%c0_1, %c0_2] : memref<16x128xf32, #tpu.memory_space<vmem>>, vector<16x128xf32>
    %2 = math.log %0 : vector<16x128xf32>
    %cst = arith.constant -1.000000e+02 : f32
    %3 = vector.broadcast %cst : f32 to vector<16x128xf32>
    %4 = arith.maximumf %2, %3 : vector<16x128xf32>
    %cst_3 = arith.constant 0.000000e+00 : f32
    %5 = vector.broadcast %cst_3 : f32 to vector<16x128xf32>
    %6 = arith.subf %5, %0 : vector<16x128xf32>
    %7 = math.log1p %6 : vector<16x128xf32>
    %cst_4 = arith.constant -1.000000e+02 : f32
    %8 = vector.broadcast %cst_4 : f32 to vector<16x128xf32>
    %9 = arith.maximumf %7, %8 : vector<16x128xf32>
    %10 = arith.mulf %1, %4 : vector<16x128xf32>
    %cst_5 = arith.constant 1.000000e+00 : f32
    %11 = vector.broadcast %cst_5 : f32 to vector<16x128xf32>
    %12 = arith.subf %11, %1 : vector<16x128xf32>
    %13 = arith.mulf %12, %9 : vector<16x128xf32>
    %14 = arith.addf %10, %13 : vector<16x128xf32>
    %cst_6 = arith.constant 0.000000e+00 : f32
    %15 = vector.broadcast %cst_6 : f32 to vector<16x128xf32>
    %16 = arith.subf %15, %14 : vector<16x128xf32>
    %cst_7 = arith.constant 0.000000e+00 : f32
    %17 = vector.broadcast %cst_7 : f32 to vector<16x128xf32>
    %18 = arith.subf %17, %16 : vector<16x128xf32>
    %19 = math.exp %18 : vector<16x128xf32>
    %cst_8 = arith.constant 1.000000e+00 : f32
    %20 = vector.broadcast %cst_8 : f32 to vector<16x128xf32>
    %21 = arith.subf %20, %19 : vector<16x128xf32>
    %22 = arith.mulf %21, %21 : vector<16x128xf32>
    %cst_9 = arith.constant 1.000000e+00 : f32
    %23 = vector.broadcast %cst_9 : f32 to vector<16x128xf32>
    %24 = arith.mulf %23, %22 : vector<16x128xf32>
    %25 = arith.mulf %24, %16 : vector<16x128xf32>
    %26 = vector.shape_cast %25 : vector<16x128xf32> to vector<2x8x128xf32>
    %cst_10 = arith.constant dense<0.000000e+00> : vector<8x128xf32>
    %27 = vector.multi_reduction <add>, %26, %cst_10 [0] : vector<2x8x128xf32> to vector<8x128xf32>
    %c0_11 = arith.constant 0 : index
    %c0_12 = arith.constant 0 : index
    %c0_13 = arith.constant 0 : index
    %28 = vector.load %arg3[%c0_11, %c0_12, %c0_13] : memref<1x8x128xf32, #tpu.memory_space<vmem>>, vector<1x8x128xf32>
    %29 = vector.shape_cast %28 : vector<1x8x128xf32> to vector<8x128xf32>
    %30 = vector.shape_cast %27 : vector<8x128xf32> to vector<1x8x128xf32>
    tpu.vector_store %arg3[%c0_11, %c0_12, %c0_13], %30 {strides = array<i32>} : memref<1x8x128xf32, #tpu.memory_space<vmem>>, vector<1x8x128xf32>,
    return
  }
  func.func @transform_0(%arg0: i32) -> (i32, i32) {
    %c0_i32 = arith.constant 0 : i32
    %c0_i32_0 = arith.constant 0 : i32
    return %arg0, %c0_i32 : i32, i32
  }
  func.func @transform_1(%arg0: i32) -> (i32, i32) {
    %c0_i32 = arith.constant 0 : i32
    %c0_i32_0 = arith.constant 0 : i32
    return %arg0, %c0_i32 : i32, i32
  }
  func.func @transform_2(%arg0: i32) -> (i32, i32, i32) {
    %c0_i32 = arith.constant 0 : i32
    %c0_i32_0 = arith.constant 0 : i32
    %c0_i32_1 = arith.constant 0 : i32
    return %arg0, %c0_i32, %c0_i32_0 : i32, i32, i32
  }
}

</mosaic_0001>

<bundles_post_ra>
// kernel: tpu_custom_call.1
= control target key start
LH: loop header
LB: loop body
LE: loop exit
PB: predicated region body
PF: predicated region fallthrough
CT: control target
= control target key end

     0   :  { %7 = vsyncpa [#allocation3], 0  ;;  %s224_s0 = inlined_call_operand.hbm [shape: f32[16,128], index: 0, kind: input, shape index: {}]   ;;  %s225_s1 = inlined_call_operand.hbm [shape: f32[16,128], index: 1, kind: input, shape index: {}]   ;;  %s226_s2 = inlined_call_operand.hbm [shape: f32[1,8,128], index: 2, kind: output, shape index: {}]  }
   0x1   :  { %8 = vsyncpa [#allocation6], 0 }
   0x2   :  { %9 = vsyncpa [#allocation4], 0  ;;  %s195_s9 = smov [#allocation2]  }
   0x3   :  { %s15_s10 = sshll.u32 %s195_s9, 4  ;;  %s16_s10 = int_to_ptr.vmem [resolvable:$true] %s15_s10 }
   0x4   :  { %s137_s11 = scalar_lea.vmem %s16_s10, 256  ;;  %p142_p1 = scmp.lt.s32.totalorder %s16_s10, %s16_s10 }
   0x5   :  { %p138_p0 = scmp.ne.s32.totalorder %s16_s10, %s137_s11  ;;  %p143_p2 = scmp.lt.s32.totalorder %s137_s11, %s137_s11 }
   0x7   :  { %p144_p3 = por %p143_p2, %p142_p1 }
   0x9   :  { %p145_p4 = pnand %p144_p3, %p138_p0 }
   0xb   :  { %148 = shalt.err (!%p145_p4)
}
   0xc   :  { %s196_s12 = smov 128   ;;  %s197_s13 = smov 8  }
   0xd   :  { %21 = dma.hbm_to_vmem [thread:$0]  %s224_s0, 256, %s16_s10, [#allocation3], %s196_s12, %s196_s12, %s197_s13  }
   0xe   :  { %s198_s16 = smov [#allocation5]  }
   0xf   :  { %s27_s17 = sshll.u32 %s198_s16, 4  ;;  %s28_s17 = int_to_ptr.vmem [resolvable:$true] %s27_s17 }
  0x10   :  { %s157_s18 = scalar_lea.vmem %s28_s17, 256  ;;  %p162_p6 = scmp.lt.s32.totalorder %s28_s17, %s28_s17 }
  0x11   :  { %p158_p5 = scmp.ne.s32.totalorder %s28_s17, %s157_s18  ;;  %p163_p7 = scmp.lt.s32.totalorder %s157_s18, %s157_s18 }
  0x13   :  { %p164_p8 = por %p163_p7, %p162_p6 }
  0x15   :  { %p165_p9 = pnand %p164_p8, %p158_p5 }
  0x17   :  { %168 = shalt.err (!%p165_p9)
}
  0x18   :  { %33 = dma.hbm_to_vmem [thread:$0]  %s225_s1, 256, %s28_s17, [#allocation6], %s196_s12, %s196_s12, %s197_s13  }
  0x19   :  { %189 = dma.done.wait [#allocation3], 256  }
  0x1a   :  { %190 = vsyncadd [#allocation3], 4294967040 }
  0x1b   :  { %191 = dma.done.wait [#allocation6], 256  }
  0x1c   :  { %192 = vsyncadd [#allocation6], 4294967040  ;;  %v40_v0 = vld [vmem:[#allocation2] sm:$0xff]  ;;  %v41_v1 = vld [vmem:[#allocation2 + $0x8] sm:$0xff]  ;;  %s199_s0 = smov [#allocation7]  }
  0x1d   :  { %117 = vlog2.f32 %v40_v0  ;;  %v50_v2 = vsub.f32 0.0, %v40_v0  ;;  %v51_v3 = vsub.f32 0.0, %v41_v1  ;;  %v42_v16 = vld [vmem:[#allocation5] sm:$0xff]  ;;  %v43_v19 = vld [vmem:[#allocation5 + $0x8] sm:$0xff]  ;;  %s102_s1 = sshll.u32 %s199_s0, 4  ;;  %s103_s1 = int_to_ptr.vmem [resolvable:$true] %s102_s1 }
  0x1e   :  { %119 = vlog2.f32 %v41_v1  ;;  %v74_v26 = vsub.f32 1.0, %v42_v16  ;;  %v75_v28 = vsub.f32 1.0, %v43_v19  ;;  %s169_s21 = scalar_lea.vmem %s103_s1, 128  ;;  %p174_p11 = scmp.lt.s32.totalorder %s103_s1, %s103_s1 }
  0x1f   :  { %v52_v4 = vadd.f32 1.0, %v50_v2  ;;  %v61_v5 = vadd.f32 1.0, %v51_v3  ;;  %v55_v6 = vmul.f32 -0.5, %v50_v2  ;;  %v64_v7 = vmul.f32 -0.5, %v51_v3  ;;  %p170_p10 = scmp.ne.s32.totalorder %s103_s1, %s169_s21  ;;  %p175_p12 = scmp.lt.s32.totalorder %s169_s21, %s169_s21 }
  0x20   :  { %v58_v10 = vand.u32 2147483647, %v50_v2  ;;  %v67_v14 = vand.u32 2147483647, %v51_v3 }
  0x21   :  { %121 = vlog2.f32 %v52_v4  ;;  %v56_v8 = vadd.f32 1.0, %v55_v6  ;;  %v65_v11 = vadd.f32 1.0, %v64_v7  ;;  %p176_p13 = por %p175_p12, %p174_p11 }
  0x22   :  { %123 = vlog2.f32 %v61_v5  ;;  %vm59_vm0 = vcmp.lt.f32.partialorder %v58_v10, 0.0004427343  ;;  %vm68_vm1 = vcmp.lt.f32.partialorder %v67_v14, 0.0004427343 }
  0x23   :  { %v57_v17 = vmul.f32 %v56_v8, %v50_v2  ;;  %v66_v21 = vmul.f32 %v65_v11, %v51_v3  ;;  %p177_p0 = pnand %p176_p13, %p170_p10 }
  0x2a   :  { %v118_v9 = vpop.eup %117 }
  0x2b   :  { %v120_v12 = vpop.eup %119  ;;  %v45_v13 = vmul.f32 0.6931472, %v118_v9 }
  0x2c   :  { %v47_v15 = vmul.f32 0.6931472, %v120_v12 }
  0x2d   :  { %v48_v20 = vmax.f32 %v45_v13, -100.0 }
  0x2e   :  { %v122_v18 = vpop.eup %121  ;;  %v49_v23 = vmax.f32 %v47_v15, -100.0 }
  0x2f   :  { %v124_v22 = vpop.eup %123  ;;  %v54_v24 = vmul.f32 0.6931472, %v122_v18  ;;  %v72_v31 = vmul.f32 %v48_v20, %v42_v16 }
  0x30   :  { %v63_v25 = vmul.f32 0.6931472, %v124_v22  ;;  %v73_v33 = vmul.f32 %v49_v23, %v43_v19 }
  0x31   :  { %v60_v27 = vsel %vm59_vm0, %v57_v17, %v54_v24 }
  0x32   :  { %v69_v29 = vsel %vm68_vm1, %v66_v21, %v63_v25  ;;  %v70_v30 = vmax.f32 %v60_v27, -100.0 }
  0x33   :  { %v71_v32 = vmax.f32 %v69_v29, -100.0 }
  0x34   :  { %v76_v34 = vmul.f32 %v74_v26, %v70_v30 }
  0x35   :  { %v77_v35 = vmul.f32 %v75_v28, %v71_v32 }
  0x36   :  { %v78_v36 = vadd.f32 %v76_v34, %v72_v31 }
  0x37   :  { %v79_v37 = vadd.f32 %v77_v35, %v73_v33 }
  0x38   :  { %v80_v38 = vsub.f32 0.0, %v78_v36 }
  0x39   :  { %v81_v39 = vsub.f32 0.0, %v79_v37 }
  0x3a   :  { %v82_v40 = vsub.f32 0.0, %v80_v38 }
  0x3b   :  { %v83_v41 = vsub.f32 0.0, %v81_v39 }
  0x3c   :  { %v84_v42 = vmul.f32 1.442695, %v82_v40 }
  0x3d   :  { %v86_v43 = vmul.f32 1.442695, %v83_v41 }
  0x3e   :  { %125 = vpow2.f32 %v84_v42 }
  0x3f   :  { %127 = vpow2.f32 %v86_v43 }
  0x4b   :  { %v126_v44 = vpop.eup %125 }
  0x4c   :  { %v128_v45 = vpop.eup %127  ;;  %v88_v46 = vsub.f32 1.0, %v126_v44 }
  0x4d   :  { %v89_v47 = vsub.f32 1.0, %v128_v45 }
  0x4e   :  { %v90_v48 = vmul.f32 %v88_v46, %v88_v46 }
  0x4f   :  { %v91_v49 = vmul.f32 %v89_v47, %v89_v47 }
  0x50   :  { %v92_v50 = vmul.f32 %v90_v48, %v80_v38 }
  0x51   :  { %v93_v51 = vmul.f32 %v91_v49, %v81_v39 }
  0x53   :  { %v94_v52 = vadd.f32 %v93_v51, %v92_v50 }
  0x55   :  { %95 = vst [vmem:[#allocation7] sm:$0xff] %v94_v52 }
  0x56   :  { %180 = shalt.err (!%p177_p0)
}
  0x57   :  { %105 = dma.vmem_to_hbm [thread:$0]  %s103_s1, 128, %s226_s2, [#allocation4]  }
  0x58   :  { %193 = dma.done.wait [#allocation4], 128  }
  0x59   :  { %194 = vsyncadd [#allocation4], 4294967168 }
  0x5a   :  { %109 = vsyncpa [#allocation3], 1 }
  0x5b   :  { %110 = vsyncpa [#allocation6], 1 }
  0x5c   :  { %111 = vsyncpa [#allocation4], 1 }

</bundles_post_ra>
